<compile_context>
chip_gen: v7x
topology: tpu7x:2x2x1
jax: 0.10.0
libtpu: 0.0.40
codegen_flags: <defaults>
</compile_context>

<pallas_src>
import functools

import jax
import jax.numpy as jnp
from jax.experimental import pallas as pl
from jax.experimental.pallas import tpu as pltpu

BN_EPS = 1e-5
LANE = 128
SUBLANE = 8


def _round_up(x, m):
    return ((x + m - 1) // m) * m


def _apply_node_func_kernel(h_ref, w1_ref, b1_ref, w2_ref, b2_ref, o_ref):
    """Fused MLP: ReLU(Linear1) -> Linear2 (BN folded in) -> ReLU."""
    # Linear 1 + ReLU.  Operands in h.dtype (bf16 stays bf16 on the MXU),
    # accumulate in f32; epilogue in f32.
    h1 = jnp.dot(h_ref[...], w1_ref[...], preferred_element_type=jnp.float32)
    h1 = jnp.maximum(h1 + b1_ref[...], 0.0)          # (1,H) broadcasts over rows

    # Linear 2 with BatchNorm1d(eval) pre-folded into (w2', b2'), then ReLU.
    h1 = h1.astype(w2_ref.dtype)                      # keep the fast MXU path
    h2 = jnp.dot(h1, w2_ref[...], preferred_element_type=jnp.float32)
    o_ref[...] = jnp.maximum(h2 + b2_ref[...], 0.0).astype(o_ref.dtype)


@functools.partial(jax.jit, static_argnames=("tile_n",))
def apply_node_func(h, w1, b1, w2, b2, gamma, beta, run_mean, run_var,
                    *, tile_n=4096):
    """h: [N, D_in] node features.  Returns [N, D_out]."""
    n, d_in = h.shape
    hidden = w1.shape[1]
    d_out = w2.shape[1]

    # ---- Fold BatchNorm1d (eval, running stats) into Linear2 (f32, one-time).
    scale = gamma.astype(jnp.float32) * jax.lax.rsqrt(
        run_var.astype(jnp.float32) + BN_EPS)
    w2f = w2.astype(jnp.float32) * scale[None, :]
    b2f = (b2.astype(jnp.float32) - run_mean.astype(jnp.float32)) * scale \
        + beta.astype(jnp.float32)

    # ---- Pad only the hidden dim to 128 lanes (lives in VMEM/vregs only).
    #      Weights are cast to h.dtype so bf16 inputs hit the bf16 MXU path;
    #      biases stay f32 for the f32 epilogue. ----
    hidden_p = _round_up(hidden, LANE)
    w1p = jnp.pad(w1, ((0, 0), (0, hidden_p - hidden))).astype(h.dtype)
    b1p = jnp.pad(b1.astype(jnp.float32),
                  (0, hidden_p - hidden)).reshape(1, hidden_p)
    w2p = jnp.pad(w2f, ((0, hidden_p - hidden), (0, 0))).astype(h.dtype)
    b2p = b2f.reshape(1, d_out)

    # ---- Row tiling: no pad/slice copies of h or the output.  grid covers n
    #      with a masked ragged tail.  Force >= 2 parallel steps for n > 1024
    #      so v7x's two TensorCores both get work. ----
    tile = _round_up(min(tile_n, n), SUBLANE)
    if n > 1024 and pl.cdiv(n, tile) < 2:
        tile = _round_up(pl.cdiv(n, 2), SUBLANE)
    grid = (pl.cdiv(n, tile),)

    itemsize = jnp.dtype(h.dtype).itemsize
    cost = pl.CostEstimate(
        flops=2 * n * (d_in * hidden_p + hidden_p * d_out),
        transcendentals=0,
        bytes_accessed=(n * (d_in + d_out) * itemsize
                        + (w1p.size + w2p.size) * itemsize
                        + (b1p.size + b2p.size) * 4),
    )

    full = lambda shape: pl.BlockSpec(shape, lambda i: (0, 0))
    out = pl.pallas_call(
        _apply_node_func_kernel,
        out_shape=jax.ShapeDtypeStruct((n, d_out), h.dtype),
        grid_spec=pltpu.PrefetchScalarGridSpec(
            num_scalar_prefetch=0,
            grid=grid,
            in_specs=[
                pl.BlockSpec((tile, d_in), lambda i: (i, 0)),   # h row tile
                full((d_in, hidden_p)),                         # W1 (padded H)
                full((1, hidden_p)),                            # b1 (padded H, f32)
                full((hidden_p, d_out)),                        # W2' (BN folded)
                full((1, d_out)),                               # b2' (BN folded, f32)
            ],
            out_specs=pl.BlockSpec((tile, d_out), lambda i: (i, 0)),
        ),
        compiler_params=pltpu.CompilerParams(
            dimension_semantics=("parallel",)),
        cost_estimate=cost,
    )(h, w1p, b1p, w2p, b2p)
    return out


def _reference(h, w1, b1, w2, b2, gamma, beta, run_mean, run_var):
    h1 = jnp.maximum(h.astype(jnp.float32) @ w1 + b1, 0.0)
    h2 = h1 @ w2 + b2
    y = (h2 - run_mean) * gamma / jnp.sqrt(run_var + BN_EPS) + beta
    return jnp.maximum(y, 0.0)


if __name__ == "__main__":
    key = jax.random.PRNGKey(0)
    k_h, k_w1, k_b1, k_w2, k_b2, k_g, k_be, k_m, k_v = jax.random.split(key, 9)

    N, D_IN, HIDDEN, D_OUT = 128, 32, 64, 32

    h = jax.random.normal(k_h, (N, D_IN), dtype=jnp.float32)

    # Deterministic synthetic parameters (module __init__ only receives `fn`;
    # shapes follow the standard GIN MLP + BatchNorm node update).
    w1 = jax.random.normal(k_w1, (D_IN, HIDDEN), dtype=jnp.float32) * 0.1
    b1 = jax.random.normal(k_b1, (HIDDEN,), dtype=jnp.float32) * 0.1
    w2 = jax.random.normal(k_w2, (HIDDEN, D_OUT), dtype=jnp.float32) * 0.1
    b2 = jax.random.normal(k_b2, (D_OUT,), dtype=jnp.float32) * 0.1
    gamma = 1.0 + 0.1 * jax.random.normal(k_g, (D_OUT,), dtype=jnp.float32)
    beta = 0.1 * jax.random.normal(k_be, (D_OUT,), dtype=jnp.float32)
    run_mean = 0.1 * jax.random.normal(k_m, (D_OUT,), dtype=jnp.float32)
    run_var = jnp.abs(jax.random.normal(k_v, (D_OUT,), dtype=jnp.float32)) + 0.5

    out = apply_node_func(h, w1, b1, w2, b2, gamma, beta, run_mean, run_var)
    out = jax.block_until_ready(out)

    ref = _reference(h, w1, b1, w2, b2, gamma, beta, run_mean, run_var)
    assert out.shape == (N, D_OUT)
    assert jnp.allclose(out, ref, atol=1e-4, rtol=1e-4), "mismatch vs reference"

    print("KERNEL_OK")
</pallas_src>

<mosaic_0001>
module attributes {stable_mosaic.version = 11 : i64} {
  func.func @_apply_node_func_kernel(%arg0: i32, %arg1: memref<128x32xf32, #tpu.memory_space<vmem>>, %arg2: memref<32x128xf32, #tpu.memory_space<vmem>>, %arg3: memref<1x128xf32, #tpu.memory_space<vmem>>, %arg4: memref<128x32xf32, #tpu.memory_space<vmem>>, %arg5: memref<1x32xf32, #tpu.memory_space<vmem>>, %arg6: memref<128x32xf32, #tpu.memory_space<vmem>>) attributes {dimension_semantics = [#tpu.dimension_semantics<parallel>], iteration_bounds = array<i64: 1>, scalar_prefetch = 0 : i64, scratch_operands = 0 : i64, tpu.core_type = #tpu.core_type<tc>, window_params = [{transform_indices = @transform_0, window_bounds = array<i64: 128, 32>}, {pipeline_mode = #tpu.pipeline_mode<synchronous>, transform_indices = @transform_1, window_bounds = array<i64: 32, 128>}, {pipeline_mode = #tpu.pipeline_mode<synchronous>, transform_indices = @transform_2, window_bounds = array<i64: 1, 128>}, {pipeline_mode = #tpu.pipeline_mode<synchronous>, transform_indices = @transform_3, window_bounds = array<i64: 128, 32>}, {pipeline_mode = #tpu.pipeline_mode<synchronous>, transform_indices = @transform_4, window_bounds = array<i64: 1, 32>}, {transform_indices = @transform_5, window_bounds = array<i64: 128, 32>}]} {
    %c0 = arith.constant 0 : index
    %c0_0 = arith.constant 0 : index
    %0 = vector.load %arg1[%c0, %c0_0] : memref<128x32xf32, #tpu.memory_space<vmem>>, vector<128x32xf32>
    %c0_1 = arith.constant 0 : index
    %c0_2 = arith.constant 0 : index
    %1 = vector.load %arg2[%c0_1, %c0_2] : memref<32x128xf32, #tpu.memory_space<vmem>>, vector<32x128xf32>
    %cst = arith.constant dense<0.000000e+00> : vector<128x128xf32>
    %2 = tpu.matmul %0, %1, %cst {dimension_numbers = #tpu.dot_dimension_numbers<[1], [0], [0], [1], [0, 0, 1, 1], [], []>} : vector<128x32xf32>, vector<32x128xf32>, vector<128x128xf32> -> vector<128x128xf32>
    %c0_3 = arith.constant 0 : index
    %c0_4 = arith.constant 0 : index
    %3 = vector.load %arg3[%c0_3, %c0_4] : memref<1x128xf32, #tpu.memory_space<vmem>>, vector<1x128xf32>
    %4 = vector.broadcast %3 : vector<1x128xf32> to vector<128x128xf32>
    %5 = arith.addf %2, %4 : vector<128x128xf32>
    %cst_5 = arith.constant 0.000000e+00 : f32
    %6 = vector.broadcast %cst_5 : f32 to vector<128x128xf32>
    %7 = arith.maximumf %5, %6 : vector<128x128xf32>
    %c0_6 = arith.constant 0 : index
    %c0_7 = arith.constant 0 : index
    %8 = vector.load %arg4[%c0_6, %c0_7] : memref<128x32xf32, #tpu.memory_space<vmem>>, vector<128x32xf32>
    %cst_8 = arith.constant dense<0.000000e+00> : vector<128x32xf32>
    %9 = tpu.matmul %7, %8, %cst_8 {dimension_numbers = #tpu.dot_dimension_numbers<[1], [0], [0], [1], [0, 0, 1, 1], [], []>} : vector<128x128xf32>, vector<128x32xf32>, vector<128x32xf32> -> vector<128x32xf32>
    %c0_9 = arith.constant 0 : index
    %c0_10 = arith.constant 0 : index
    %10 = vector.load %arg5[%c0_9, %c0_10] : memref<1x32xf32, #tpu.memory_space<vmem>>, vector<1x32xf32>
    %11 = vector.broadcast %10 : vector<1x32xf32> to vector<128x32xf32>
    %12 = arith.addf %9, %11 : vector<128x32xf32>
    %cst_11 = arith.constant 0.000000e+00 : f32
    %13 = vector.broadcast %cst_11 : f32 to vector<128x32xf32>
    %14 = arith.maximumf %12, %13 : vector<128x32xf32>
    %c0_12 = arith.constant 0 : index
    %c0_13 = arith.constant 0 : index
    %15 = vector.load %arg6[%c0_12, %c0_13] : memref<128x32xf32, #tpu.memory_space<vmem>>, vector<128x32xf32>
    tpu.vector_store %arg6[%c0_12, %c0_13], %14 {strides = array<i32>} : memref<128x32xf32, #tpu.memory_space<vmem>>, vector<128x32xf32>,
    return
  }
  func.func @transform_0(%arg0: i32) -> (i32, i32) {
    %c0_i32 = arith.constant 0 : i32
    %c0_i32_0 = arith.constant 0 : i32
    return %arg0, %c0_i32 : i32, i32
  }
  func.func @transform_1(%arg0: i32) -> (i32, i32) {
    %c0_i32 = arith.constant 0 : i32
    %c0_i32_0 = arith.constant 0 : i32
    %c0_i32_1 = arith.constant 0 : i32
    return %c0_i32, %c0_i32_0 : i32, i32
  }
  func.func @transform_2(%arg0: i32) -> (i32, i32) {
    %c0_i32 = arith.constant 0 : i32
    %c0_i32_0 = arith.constant 0 : i32
    %c0_i32_1 = arith.constant 0 : i32
    return %c0_i32, %c0_i32_0 : i32, i32
  }
  func.func @transform_3(%arg0: i32) -> (i32, i32) {
    %c0_i32 = arith.constant 0 : i32
    %c0_i32_0 = arith.constant 0 : i32
    %c0_i32_1 = arith.constant 0 : i32
    return %c0_i32, %c0_i32_0 : i32, i32
  }
  func.func @transform_4(%arg0: i32) -> (i32, i32) {
    %c0_i32 = arith.constant 0 : i32
    %c0_i32_0 = arith.constant 0 : i32
    %c0_i32_1 = arith.constant 0 : i32
    return %c0_i32, %c0_i32_0 : i32, i32
  }
  func.func @transform_5(%arg0: i32) -> (i32, i32) {
    %c0_i32 = arith.constant 0 : i32
    %c0_i32_0 = arith.constant 0 : i32
    return %arg0, %c0_i32 : i32, i32
  }
}

</mosaic_0001>

<bundles_post_ra>
// kernel: apply_node_func.1
= control target key start
LH: loop header
LB: loop body
LE: loop exit
PB: predicated region body
PF: predicated region fallthrough
CT: control target
= control target key end

     0   :  { %vm47_vm0 = vcmask 261120   ;;  %s899_s1 = inlined_call_operand.vmem [shape: f32[32,128], index: 1, kind: input, shape index: {}]   ;;  %s900_s0 = inlined_call_operand.vmem [shape: f32[128,32], index: 0, kind: input, shape index: {}]   ;;  %s901_s3 = inlined_call_operand.vmem [shape: f32[128,32], index: 3, kind: input, shape index: {}]   ;;  %s902_s2 = inlined_call_operand.vmem [shape: f32[1,128], index: 2, kind: input, shape index: {}]   ;;  %s903_s4 = inlined_call_operand.vmem [shape: f32[1,32], index: 4, kind: input, shape index: {}]   ;;  %s904_s5 = inlined_call_operand.vmem [shape: f32[128,32], index: 5, kind: output, shape index: {}]  }
   0x1   :  { %v36_v0 = vld [vmem:[%s899_s1] sm:$0xff]  ;;  %v37_v1 = vld [vmem:[%s899_s1 + $0x8] sm:$0xff]  ;;  %v38_v2 = vld [vmem:[%s899_s1 + $0x10] sm:$0xff] }
   0x2   :  { %v619_v3 = vpack.c.bf16 %v37_v1, %v36_v0  ;;  %v39_v4 = vld [vmem:[%s899_s1 + $0x18] sm:$0xff]  ;;  %v20_v5 = vld [vmem:[%s900_s0] sm:$0xff]  ;;  %v258_v8 = vld [vmem:[%s901_s3 + $0x8] sm:$0xff] }
   0x3   :  { %v623_v6 = vpack.c.bf16 %v39_v4, %v38_v2  ;;  %539 = vmatprep.mubr.msk.f32.mxu0 %vm47_vm0, %v20_v5  ;;  %v257_v7 = vld [vmem:[%s901_s3] sm:$0xff]  ;;  %v259_v9 = vld [vmem:[%s901_s3 + $0x10] sm:$0xff]  ;;  %v260_v10 = vld [vmem:[%s901_s3 + $0x18] sm:$0xff] }
   0x4   :  { %620 = vmatprep.subr.bf16.mxu0 %v619_v3  ;;  %v21_v11 = vld [vmem:[%s900_s0 + $0x8] sm:$0xff]  ;;  %v627_v12 = vpack.c.bf16 %v258_v8, %v257_v7  ;;  %v22_v13 = vld [vmem:[%s900_s0 + $0x10] sm:$0xff]  ;;  %v631_v14 = vpack.c.bf16 %v260_v10, %v259_v9  ;;  %v261_v15 = vld [vmem:[%s901_s3 + $0x20] sm:$0xff] }
   0x5   :  { %622 = vmatpush3.bf16.msra.mxu0 %v619_v3  ;;  %v262_v16 = vld [vmem:[%s901_s3 + $0x28] sm:$0xff]  ;;  %v23_v17 = vld [vmem:[%s900_s0 + $0x18] sm:$0xff]  ;;  %v24_v18 = vld [vmem:[%s900_s0 + $0x20] sm:$0xff] }
   0x6   :  { %624 = vmatprep.subr.bf16.mxu0 %v623_v6  ;;  %659 = vmatprep.subr.bf16.mxu1 %v627_v12  ;;  %v635_v19 = vpack.c.bf16 %v262_v16, %v261_v15  ;;  %v263_v20 = vld [vmem:[%s901_s3 + $0x30] sm:$0xff]  ;;  %v264_v21 = vld [vmem:[%s901_s3 + $0x38] sm:$0xff]  ;;  %v25_v22 = vld [vmem:[%s900_s0 + $0x28] sm:$0xff] }
   0x7   :  { %667 = vmatpush3.bf16.msra.mxu1 %v627_v12  ;;  %v26_v23 = vld [vmem:[%s900_s0 + $0x30] sm:$0xff]  ;;  %v639_v24 = vpack.c.bf16 %v264_v21, %v263_v20  ;;  %v265_v25 = vld [vmem:[%s901_s3 + $0x40] sm:$0xff]  ;;  %v266_v26 = vld [vmem:[%s901_s3 + $0x48] sm:$0xff] }
   0x8   :  { %660 = vmatprep.subr.bf16.mxu1 %v631_v14  ;;  %v27_v27 = vld [vmem:[%s900_s0 + $0x38] sm:$0xff]  ;;  %v28_v28 = vld [vmem:[%s900_s0 + $0x40] sm:$0xff]  ;;  %v643_v29 = vpack.c.bf16 %v266_v26, %v265_v25  ;;  %v267_v30 = vld [vmem:[%s901_s3 + $0x50] sm:$0xff] }
   0x9   :  { %626 = vmatpush3.bf16.msra.mxu0 %v623_v6  ;;  %v268_v31 = vld [vmem:[%s901_s3 + $0x58] sm:$0xff]  ;;  %v29_v32 = vld [vmem:[%s900_s0 + $0x48] sm:$0xff]  ;;  %v30_v33 = vld [vmem:[%s900_s0 + $0x50] sm:$0xff] }
   0xa   :  { %628 = vmatprep.subr.bf16.mxu0 %v627_v12  ;;  %v647_v34 = vpack.c.bf16 %v268_v31, %v267_v30  ;;  %v269_v35 = vld [vmem:[%s901_s3 + $0x60] sm:$0xff]  ;;  %v270_v36 = vld [vmem:[%s901_s3 + $0x68] sm:$0xff]  ;;  %v31_v37 = vld [vmem:[%s900_s0 + $0x58] sm:$0xff] }
   0xb   :  { %668 = vmatpush3.bf16.msra.mxu1 %v631_v14  ;;  %v32_v38 = vld [vmem:[%s900_s0 + $0x60] sm:$0xff]  ;;  %v651_v39 = vpack.c.bf16 %v270_v36, %v269_v35  ;;  %v33_v40 = vld [vmem:[%s900_s0 + $0x68] sm:$0xff]  ;;  %v34_v41 = vld [vmem:[%s900_s0 + $0x70] sm:$0xff] }
   0xc   :  { %540 = vmatmul.mubr.msk.f32.vlgmr.msra.gmra.mrb[0].mxu0 %vm47_vm0, %v21_v11  ;;  %661 = vmatprep.subr.bf16.mxu1 %v635_v19  ;;  %v35_v42 = vld [vmem:[%s900_s0 + $0x78] sm:$0xff]  ;;  %v271_v43 = vld [vmem:[%s901_s3 + $0x70] sm:$0xff]  ;;  %v461_v46 = vld [vmem:[%s902_s2] ss:$0 sm:$0xff] }
   0xd   :  { %542 = vmatprep.mubr.msk.f32.mxu0 %vm47_vm0, %v22_v13  ;;  %630 = vmatpush3.bf16.msra.mxu0 %v627_v12  ;;  %v272_v44 = vld [vmem:[%s901_s3 + $0x78] sm:$0xff]  ;;  %v478_v31 = vld [vmem:[%s903_s4] ss:$0 sm:$0xff] }
   0xe   :  { %632 = vmatprep.subr.bf16.mxu0 %v631_v14  ;;  %v655_v45 = vpack.c.bf16 %v272_v44, %v271_v43 }
   0xf   :  { %669 = vmatpush3.bf16.msra.mxu1 %v635_v19 }
  0x10   :  { %543 = vmatmul.mubr.msk.f32.gmra.mrb[2].mxu0 %vm47_vm0, %v23_v17  ;;  %662 = vmatprep.subr.bf16.mxu1 %v639_v24 }
  0x11   :  { %545 = vmatprep.mubr.msk.f32.mxu0 %vm47_vm0, %v24_v18  ;;  %634 = vmatpush3.bf16.msra.mxu0 %v631_v14 }
  0x12   :  { %636 = vmatprep.subr.bf16.mxu0 %v635_v19 }
  0x13   :  { %670 = vmatpush3.bf16.msra.mxu1 %v639_v24 }
  0x14   :  { %546 = vmatmul.mubr.msk.f32.gmra.mrb[4].mxu0 %vm47_vm0, %v25_v22  ;;  %663 = vmatprep.subr.bf16.mxu1 %v643_v29 }
  0x15   :  { %548 = vmatprep.mubr.msk.f32.mxu0 %vm47_vm0, %v26_v23  ;;  %638 = vmatpush3.bf16.msra.mxu0 %v635_v19 }
  0x16   :  { %640 = vmatprep.subr.bf16.mxu0 %v639_v24 }
  0x17   :  { %671 = vmatpush3.bf16.msra.mxu1 %v643_v29 }
  0x18   :  { %549 = vmatmul.mubr.msk.f32.gmra.mrb[6].mxu0 %vm47_vm0, %v27_v27  ;;  %664 = vmatprep.subr.bf16.mxu1 %v647_v34 }
  0x19   :  { %551 = vmatprep.mubr.msk.f32.mxu0 %vm47_vm0, %v28_v28  ;;  %642 = vmatpush3.bf16.msra.mxu0 %v639_v24 }
  0x1a   :  { %644 = vmatprep.subr.bf16.mxu0 %v643_v29 }
  0x1b   :  { %672 = vmatpush3.bf16.msra.mxu1 %v647_v34 }
  0x1c   :  { %552 = vmatmul.mubr.msk.f32.gmra.mrb[8].mxu0 %vm47_vm0, %v29_v32  ;;  %665 = vmatprep.subr.bf16.mxu1 %v651_v39 }
  0x1d   :  { %554 = vmatprep.mubr.msk.f32.mxu0 %vm47_vm0, %v30_v33  ;;  %646 = vmatpush3.bf16.msra.mxu0 %v643_v29 }
  0x1e   :  { %648 = vmatprep.subr.bf16.mxu0 %v647_v34 }
  0x1f   :  { %673 = vmatpush3.bf16.msra.mxu1 %v651_v39 }
  0x20   :  { %555 = vmatmul.mubr.msk.f32.gmra.mrb[10].mxu0 %vm47_vm0, %v31_v37  ;;  %666 = vmatprep.subr.bf16.mxu1 %v655_v45 }
  0x21   :  { %557 = vmatprep.mubr.msk.f32.mxu0 %vm47_vm0, %v32_v38  ;;  %650 = vmatpush3.bf16.msra.mxu0 %v647_v34 }
  0x22   :  { %652 = vmatprep.subr.bf16.mxu0 %v651_v39 }
  0x23   :  { %674 = vmatpush3.bf16.msra.mxu1 %v655_v45 }
  0x24   :  { %558 = vmatmul.mubr.msk.f32.gmra.mrb[12].mxu0 %vm47_vm0, %v33_v40 }
  0x25   :  { %560 = vmatprep.mubr.msk.f32.mxu0 %vm47_vm0, %v34_v41  ;;  %654 = vmatpush3.bf16.msra.mxu0 %v651_v39 }
  0x26   :  { %656 = vmatprep.subr.bf16.mxu0 %v655_v45 }
  0x28   :  { %561 = vmatmul.mubr.msk.f32.gmra.mrb[14].mxu0 %vm47_vm0, %v35_v42 }
  0x29   :  { %658 = vmatpush3.bf16.msra.mxu0 %v655_v45 }
  0xdf   :  { %v541_v47 = vpop.f32.mrb[0].mxu0 }
  0xe0   :  { %v168_v48 = vadd.f32 %v541_v47, %v461_v46  ;;  %v162_v49 = vpop.f32.mrb[1].mxu0 }
  0xe1   :  { %v163_v50 = vadd.f32 %v461_v46, %v162_v49 }
  0xe2   :  { %v242_v53 = vmax.f32 %v168_v48, 0.0 }
  0xe3   :  { %v241_v51 = vmax.f32 %v163_v50, 0.0  ;;  %v544_v52 = vpop.f32.mrb[2].mxu0 }
  0xe4   :  { %v178_v54 = vadd.f32 %v544_v52, %v461_v46  ;;  %v172_v55 = vpop.f32.mrb[3].mxu0 }
  0xe5   :  { %v173_v56 = vadd.f32 %v461_v46, %v172_v55  ;;  %595 = vmatprep.mubr.f32.mxu0 %v241_v51 }
  0xe6   :  { %596 = vmatmul.mubr.f32.vlgmr.msra.gmra.mrb[16].mxu0 %v242_v53  ;;  %v244_v59 = vmax.f32 %v178_v54, 0.0 }
  0xe7   :  { %v243_v57 = vmax.f32 %v173_v56, 0.0  ;;  %v547_v58 = vpop.f32.mrb[4].mxu0 }
  0xe8   :  { %v188_v60 = vadd.f32 %v547_v58, %v461_v46  ;;  %v182_v61 = vpop.f32.mrb[5].mxu0 }
  0xe9   :  { %v183_v62 = vadd.f32 %v461_v46, %v182_v61  ;;  %598 = vmatprep.mubr.f32.mxu0 %v243_v57 }
  0xea   :  { %599 = vmatmul.mubr.f32.gmra.mrb[18].mxu0 %v244_v59  ;;  %v246_v1 = vmax.f32 %v188_v60, 0.0 }
  0xeb   :  { %v245_v63 = vmax.f32 %v183_v62, 0.0  ;;  %v550_v0 = vpop.f32.mrb[6].mxu0 }
  0xec   :  { %v198_v2 = vadd.f32 %v550_v0, %v461_v46  ;;  %v192_v3 = vpop.f32.mrb[7].mxu0 }
  0xed   :  { %601 = vmatprep.mubr.f32.mxu0 %v245_v63  ;;  %v193_v4 = vadd.f32 %v461_v46, %v192_v3 }
  0xee   :  { %602 = vmatmul.mubr.f32.gmra.mrb[20].mxu0 %v246_v1  ;;  %v248_v7 = vmax.f32 %v198_v2, 0.0 }
  0xef   :  { %v553_v5 = vpop.f32.mrb[8].mxu0  ;;  %v247_v6 = vmax.f32 %v193_v4, 0.0 }
  0xf0   :  { %v208_v8 = vadd.f32 %v553_v5, %v461_v46  ;;  %v202_v9 = vpop.f32.mrb[9].mxu0 }
  0xf1   :  { %v203_v10 = vadd.f32 %v461_v46, %v202_v9  ;;  %604 = vmatprep.mubr.f32.mxu1 %v247_v6 }
  0xf2   :  { %605 = vmatmul.mubr.f32.vlgmr.msra.gmra.mrb[0].mxu1 %v248_v7  ;;  %v250_v13 = vmax.f32 %v208_v8, 0.0 }
  0xf3   :  { %v249_v11 = vmax.f32 %v203_v10, 0.0  ;;  %v556_v12 = vpop.f32.mrb[10].mxu0 }
  0xf4   :  { %v218_v14 = vadd.f32 %v556_v12, %v461_v46  ;;  %v212_v15 = vpop.f32.mrb[11].mxu0 }
  0xf5   :  { %v213_v16 = vadd.f32 %v461_v46, %v212_v15  ;;  %607 = vmatprep.mubr.f32.mxu1 %v249_v11 }
  0xf6   :  { %608 = vmatmul.mubr.f32.gmra.mrb[2].mxu1 %v250_v13  ;;  %v252_v19 = vmax.f32 %v218_v14, 0.0 }
  0xf7   :  { %v251_v17 = vmax.f32 %v213_v16, 0.0  ;;  %v559_v18 = vpop.f32.mrb[12].mxu0 }
  0xf8   :  { %v228_v20 = vadd.f32 %v559_v18, %v461_v46  ;;  %v222_v21 = vpop.f32.mrb[13].mxu0 }
  0xf9   :  { %v223_v22 = vadd.f32 %v461_v46, %v222_v21  ;;  %610 = vmatprep.mubr.f32.mxu1 %v251_v17 }
  0xfa   :  { %611 = vmatmul.mubr.f32.gmra.mrb[4].mxu1 %v252_v19  ;;  %v254_v25 = vmax.f32 %v228_v20, 0.0 }
  0xfb   :  { %v253_v23 = vmax.f32 %v223_v22, 0.0  ;;  %v562_v24 = vpop.f32.mrb[14].mxu0 }
  0xfc   :  { %v238_v26 = vadd.f32 %v562_v24, %v461_v46  ;;  %v232_v27 = vpop.f32.mrb[15].mxu0 }
  0xfd   :  { %v233_v28 = vadd.f32 %v461_v46, %v232_v27  ;;  %613 = vmatprep.mubr.f32.mxu1 %v253_v23 }
  0xfe   :  { %614 = vmatmul.mubr.f32.gmra.mrb[6].mxu1 %v254_v25  ;;  %v256_v30 = vmax.f32 %v238_v26, 0.0 }
  0xff   :  { %v255_v29 = vmax.f32 %v233_v28, 0.0 }
 0x101   :  { %616 = vmatprep.mubr.f32.mxu1 %v255_v29 }
 0x102   :  { %617 = vmatmul.mubr.f32.gmra.mrb[8].mxu1 %v256_v30 }
 0x1b9   :  { %v597_v32 = vpop.f32.mrb[16].mxu0 }
 0x1ba   :  { %v352_v33 = vadd.f32 %v597_v32, %v478_v31  ;;  %v346_v34 = vpop.f32.mrb[17].mxu0 }
 0x1bb   :  { %v347_v35 = vadd.f32 %v478_v31, %v346_v34 }
 0x1bc   :  { %v426_v36 = vmax.f32 %v352_v33, 0.0 }
 0x1bd   :  { %v425_v37 = vmax.f32 %v347_v35, 0.0  ;;  %v600_v38 = vpop.f32.mrb[18].mxu0 }
 0x1be   :  { %442 = vst.msk [vmem:[%s904_s5 + $0x8] sm:$0xff] %vm47_vm0, %v426_v36  ;;  %v362_v39 = vadd.f32 %v600_v38, %v478_v31  ;;  %v356_v40 = vpop.f32.mrb[19].mxu0 }
 0x1bf   :  { %441 = vst.msk [vmem:[%s904_s5] sm:$0xff] %vm47_vm0, %v425_v37  ;;  %v357_v41 = vadd.f32 %v478_v31, %v356_v40 }
 0x1c0   :  { %v428_v42 = vmax.f32 %v362_v39, 0.0 }
 0x1c1   :  { %v427_v43 = vmax.f32 %v357_v41, 0.0  ;;  %v603_v44 = vpop.f32.mrb[20].mxu0 }
 0x1c2   :  { %444 = vst.msk [vmem:[%s904_s5 + $0x18] sm:$0xff] %vm47_vm0, %v428_v42  ;;  %v372_v45 = vadd.f32 %v603_v44, %v478_v31  ;;  %v366_v46 = vpop.f32.mrb[21].mxu0 }
 0x1c3   :  { %443 = vst.msk [vmem:[%s904_s5 + $0x10] sm:$0xff] %vm47_vm0, %v427_v43  ;;  %v367_v47 = vadd.f32 %v478_v31, %v366_v46 }
 0x1c4   :  { %v430_v48 = vmax.f32 %v372_v45, 0.0 }
 0x1c5   :  { %v429_v49 = vmax.f32 %v367_v47, 0.0  ;;  %v606_v50 = vpop.f32.mrb[0].mxu1 }
 0x1c6   :  { %446 = vst.msk [vmem:[%s904_s5 + $0x28] sm:$0xff] %vm47_vm0, %v430_v48  ;;  %v382_v51 = vadd.f32 %v606_v50, %v478_v31  ;;  %v376_v52 = vpop.f32.mrb[1].mxu1 }
 0x1c7   :  { %445 = vst.msk [vmem:[%s904_s5 + $0x20] sm:$0xff] %vm47_vm0, %v429_v49  ;;  %v377_v53 = vadd.f32 %v478_v31, %v376_v52 }
 0x1c8   :  { %v432_v54 = vmax.f32 %v382_v51, 0.0 }
 0x1c9   :  { %v431_v55 = vmax.f32 %v377_v53, 0.0  ;;  %v609_v56 = vpop.f32.mrb[2].mxu1 }
 0x1ca   :  { %448 = vst.msk [vmem:[%s904_s5 + $0x38] sm:$0xff] %vm47_vm0, %v432_v54  ;;  %v392_v57 = vadd.f32 %v609_v56, %v478_v31  ;;  %v386_v58 = vpop.f32.mrb[3].mxu1 }
 0x1cb   :  { %447 = vst.msk [vmem:[%s904_s5 + $0x30] sm:$0xff] %vm47_vm0, %v431_v55  ;;  %v387_v59 = vadd.f32 %v478_v31, %v386_v58 }
 0x1cc   :  { %v434_v60 = vmax.f32 %v392_v57, 0.0 }
 0x1cd   :  { %v433_v61 = vmax.f32 %v387_v59, 0.0  ;;  %v612_v62 = vpop.f32.mrb[4].mxu1 }
 0x1ce   :  { %450 = vst.msk [vmem:[%s904_s5 + $0x48] sm:$0xff] %vm47_vm0, %v434_v60  ;;  %v402_v63 = vadd.f32 %v612_v62, %v478_v31  ;;  %v396_v0 = vpop.f32.mrb[5].mxu1 }
 0x1cf   :  { %449 = vst.msk [vmem:[%s904_s5 + $0x40] sm:$0xff] %vm47_vm0, %v433_v61  ;;  %v397_v1 = vadd.f32 %v478_v31, %v396_v0 }
 0x1d0   :  { %v436_v2 = vmax.f32 %v402_v63, 0.0 }
 0x1d1   :  { %v435_v3 = vmax.f32 %v397_v1, 0.0  ;;  %v615_v4 = vpop.f32.mrb[6].mxu1 }
 0x1d2   :  { %452 = vst.msk [vmem:[%s904_s5 + $0x58] sm:$0xff] %vm47_vm0, %v436_v2  ;;  %v412_v5 = vadd.f32 %v615_v4, %v478_v31  ;;  %v406_v6 = vpop.f32.mrb[7].mxu1 }
 0x1d3   :  { %451 = vst.msk [vmem:[%s904_s5 + $0x50] sm:$0xff] %vm47_vm0, %v435_v3  ;;  %v407_v7 = vadd.f32 %v478_v31, %v406_v6 }
 0x1d4   :  { %v438_v8 = vmax.f32 %v412_v5, 0.0 }
 0x1d5   :  { %v437_v9 = vmax.f32 %v407_v7, 0.0  ;;  %v618_v10 = vpop.f32.mrb[8].mxu1 }
 0x1d6   :  { %454 = vst.msk [vmem:[%s904_s5 + $0x68] sm:$0xff] %vm47_vm0, %v438_v8  ;;  %v422_v11 = vadd.f32 %v618_v10, %v478_v31  ;;  %v416_v12 = vpop.f32.mrb[9].mxu1 }
 0x1d7   :  { %453 = vst.msk [vmem:[%s904_s5 + $0x60] sm:$0xff] %vm47_vm0, %v437_v9  ;;  %v417_v13 = vadd.f32 %v478_v31, %v416_v12 }
 0x1d8   :  { %v440_v14 = vmax.f32 %v422_v11, 0.0 }
 0x1d9   :  { %v439_v15 = vmax.f32 %v417_v13, 0.0 }
 0x1da   :  { %456 = vst.msk [vmem:[%s904_s5 + $0x78] sm:$0xff] %vm47_vm0, %v440_v14 }
 0x1db   :  { %455 = vst.msk [vmem:[%s904_s5 + $0x70] sm:$0xff] %vm47_vm0, %v439_v15 }

</bundles_post_ra>
